<compile_context>
chip_gen: v7x
topology: tpu7x:2x2x1
jax: 0.10.0
libtpu: 0.0.40
codegen_flags: <defaults>
</compile_context>

<pallas_src>
import numpy as np
import jax
import jax.numpy as jnp
from jax.experimental import pallas as pl
from jax.experimental.pallas import tpu as pltpu


# ---------------------------------------------------------------------------
# Pallas kernel (lane-dense): out[a, c, n] = scale[c]*loc[c, n] (c<3) + base[a, c]
# ---------------------------------------------------------------------------
def _anchor_kernel(sidx_ref, loc_ref, scale_ref, base_ref, out_ref):
    # sidx_ref:  (T,) int32 SMEM  — per-tile scale index (used by index_maps only)
    # loc_ref:   (3, TN)   int32  — x/y/z on sublanes, voxels on lanes
    # scale_ref: (1, 3, 1) f32    — stride / voxel_scale for this tile's scale
    # base_ref:  (1, A, 7, 1) f32 — cell anchors for this tile's scale
    # out_ref:   (A, 7, TN) f32   — lane-dense output block
    del sidx_ref
    loc = loc_ref[...].astype(jnp.float32)                       # (3, TN)
    scaled = loc * scale_ref[0]                                  # (3, TN)
    tn = scaled.shape[-1]
    full7 = jnp.concatenate(
        [scaled, jnp.zeros((4, tn), jnp.float32)], axis=0)       # (7, TN)
    out_ref[...] = full7[None, :, :] + base_ref[0]               # (A, 7, TN)


def _grid_anchors_fused(locations, cell_anchors_np, strides_np, voxel_scale,
                        tile_n=2048):
    """locations: list of (N_s, 4) int32; cell_anchors_np: (S, A, 7) f32;
       strides_np: (S, 3) f32. Returns list of (N_s*A, 7) f32 anchors."""
    S = len(locations)
    A = int(cell_anchors_np.shape[1])

    ns = [int(loc.shape[0]) for loc in locations]
    npads = [((n + tile_n - 1) // tile_n) * tile_n for n in ns]
    tiles = [p // tile_n for p in npads]
    T = int(sum(tiles))
    offsets = [0]
    for p in npads:
        offsets.append(offsets[-1] + p)
    total_pad = offsets[-1]

    if T == 0:
        return [jnp.zeros((0, 7), jnp.float32) for _ in ns]

    # Per-tile scale index, scalar-prefetched into SMEM for the index_maps.
    sidx = np.repeat(np.arange(S, dtype=np.int32), tiles)

    # (3, total_pad) int32: transpose + lane-pad each scale's xyz locations.
    cols = []
    for loc, n, p in zip(locations, ns, npads):
        lt = jnp.transpose(loc[:, 0:3]).astype(jnp.int32)        # (3, n)
        if p != n:
            lt = jnp.pad(lt, ((0, 0), (0, p - n)))
        cols.append(lt)
    loc_all = jnp.concatenate(cols, axis=1) if len(cols) > 1 else cols[0]

    scale_all = (strides_np / float(voxel_scale)).astype(np.float32)
    scale_all = scale_all.reshape(S, 3, 1)                        # (S, 3, 1)
    base_all = cell_anchors_np.astype(np.float32).reshape(S, A, 7, 1)

    out = pl.pallas_call(
        _anchor_kernel,
        out_shape=jax.ShapeDtypeStruct((A, 7, total_pad), jnp.float32),
        grid_spec=pltpu.PrefetchScalarGridSpec(
            num_scalar_prefetch=1,
            grid=(T,),
            in_specs=[
                pl.BlockSpec((3, tile_n), lambda i, sidx: (0, i)),
                pl.BlockSpec((1, 3, 1), lambda i, sidx: (sidx[i], 0, 0)),
                pl.BlockSpec((1, A, 7, 1), lambda i, sidx: (sidx[i], 0, 0, 0)),
            ],
            out_specs=pl.BlockSpec((A, 7, tile_n), lambda i, sidx: (0, 0, i)),
        ),
        compiler_params=pltpu.CompilerParams(
            dimension_semantics=("parallel",)),
    )(jnp.asarray(sidx), loc_all, jnp.asarray(scale_all), jnp.asarray(base_all))

    # One transpose/reshape back to the torch row layout (row = n*A + a).
    anchors = []
    for n, off in zip(ns, offsets[:-1]):
        a_s = out[:, :, off:off + n]                              # (A, 7, n)
        anchors.append(jnp.transpose(a_s, (2, 0, 1)).reshape(n * A, 7))
    return anchors


# ---------------------------------------------------------------------------
# Parameter construction (deterministic, mirrors __init__)
# ---------------------------------------------------------------------------
def _generate_anchors_3d_yaws(size, yaws, centroids=np.array([[0, 0, 0]])):
    anchors = []
    for j in range(yaws.shape[0]):
        for k in range(centroids.shape[0]):
            anchor = np.concatenate(
                [centroids[k], size, yaws[j]]).reshape([1, -1])
            anchors.append(anchor)
    return np.concatenate(anchors, 0).astype(np.float32)


def _generate_anchors_3d_ratio(size, ratios, centroids=np.array([[0, 0, 0]])):
    anchors = []
    yaw = np.array([0], dtype=np.float32)
    for j in range(ratios.shape[0]):
        size_j = size * ratios[j]
        for k in range(centroids.shape[0]):
            anchor = np.concatenate(
                [centroids[k], size_j, yaw]).reshape([1, -1])
            anchors.append(anchor)
    return np.concatenate(anchors, 0).astype(np.float32)


def _generate_anchors_3d(size, yaws, ratios, use_yaw):
    if use_yaw:
        return _generate_anchors_3d_yaws(size, yaws)
    return _generate_anchors_3d_ratio(size, ratios)


class AnchorGeneratorPallas:
    def __init__(self,
                 voxel_scale=20,
                 sizes_3d=((0.2, 1, 3), (0.5, 2, 3), (1, 3, 3)),
                 yaws=(0, -1.57),
                 ratios=((1, 1, 1), (1, 2, 1)),
                 use_yaws=(1, 1, 1),
                 anchor_strides=((8, 8, 729), (16, 16, 729), (32, 32, 729)),
                 scene_size=(8, 8, 5),
                 straddle_thresh=0,
                 tile_n=2048):
        sizes_3d = np.array(sizes_3d, dtype=np.float32)
        anchor_strides = np.array(anchor_strides, dtype=np.float32)
        yaws_np = np.array(yaws, dtype=np.float32).reshape([-1, 1])
        ratios_np = np.array(ratios, dtype=np.float32)
        assert sizes_3d.shape[1] == 3
        assert anchor_strides.shape[1] == 3
        assert sizes_3d.shape[0] == anchor_strides.shape[0]

        cell_anchors_np = [
            _generate_anchors_3d(size, yaws_np, ratios_np, uy)
            for size, uy in zip(sizes_3d, use_yaws)
        ]
        # The fused single-launch kernel (and the reference module's
        # anchor_num_per_loc bookkeeping) require the same anchor count per scale.
        assert len({ca.shape for ca in cell_anchors_np}) == 1, \
            'all scales must share the same cell-anchor count'
        self._cell_anchors_np = np.stack(cell_anchors_np, axis=0)   # (S, A, 7)
        self.cell_anchors = [jnp.asarray(ca) for ca in cell_anchors_np]
        # TODO(synk): OBJ_DEF.check_bboxes is a validation-only hook with no
        # definition in the reference; skipped.
        self.anchor_num_per_loc = len(yaws)
        self.voxel_scale = voxel_scale
        self._strides_np = anchor_strides                           # (S, 3)
        self.strides = jnp.asarray(anchor_strides)
        self.straddle_thresh = straddle_thresh
        self.anchor_mode = 'yx_zb'
        self.scene_size = jnp.asarray(scene_size, dtype=jnp.float32)
        self.tile_n = int(tile_n)

    def num_anchors_per_location(self):
        return self.anchor_num_per_loc

    @staticmethod
    def _examples_bidx_2_sizes(bidx, batch_size):
        # Single-pass bincount (locations must be grouped by batch index, which
        # is what the PyTorch reference's cumulative-count semantics assume).
        counts = jnp.bincount(bidx.astype(jnp.int32), length=batch_size)
        e = jnp.cumsum(counts)
        s = e - counts
        return jnp.stack([s, e], axis=1).astype(jnp.int32)          # (B, 2)

    def grid_anchors(self, locations):
        assert len(self.cell_anchors) == len(locations), 'scales num not right'
        return _grid_anchors_fused(
            locations, self._cell_anchors_np, self._strides_np,
            self.voxel_scale, tile_n=self.tile_n)

    def forward(self, locations_per_scale, batch_size):
        """locations_per_scale: list of (N_i, 4) int32 arrays, last col = batch idx.

        Returns list of (anchors (N_i*A, 7) f32, examples_idxscope (B, 2) i32).
        (BoxList3D wrapping / visualization from the reference is not replicated.)
        """
        anchors_all = self.grid_anchors(locations_per_scale)
        idxscopes = [
            self._examples_bidx_2_sizes(loc[:, -1], batch_size)
            * self.anchor_num_per_loc
            for loc in locations_per_scale
        ]
        return list(zip(anchors_all, idxscopes))


# ---------------------------------------------------------------------------
# Demo / correctness check
# ---------------------------------------------------------------------------
def _make_locations(key, n, spatial, batch_size):
    kx, kb = jax.random.split(key)
    xyz = jax.random.randint(kx, (n, 3), 0, spatial, dtype=jnp.int32)
    bidx = jnp.sort(jax.random.randint(kb, (n,), 0, batch_size, dtype=jnp.int32))
    return jnp.concatenate([xyz, bidx[:, None]], axis=1)


def _reference_anchors(locations, base_anchors, stride, voxel_scale):
    loc = np.asarray(locations)[:, 0:3].astype(np.float32)
    centroids = loc / voxel_scale * np.asarray(stride).reshape(1, 3)
    centroids = np.concatenate(
        [centroids, np.zeros((centroids.shape[0], 4), np.float32)], axis=1)
    out = centroids[:, None, :] + np.asarray(base_anchors)[None, :, :]
    return out.reshape(-1, 7)


if __name__ == "__main__":
    key = jax.random.PRNGKey(0)
    batch_size = 2
    gen = AnchorGeneratorPallas()

    # 3 scales (matching the 3 default sizes/strides), small sparse point counts.
    ns = [24, 16, 8]
    spatials = [16, 8, 4]
    keys = jax.random.split(key, len(ns))
    locations = [
        _make_locations(k, n, sp, batch_size)
        for k, n, sp in zip(keys, ns, spatials)
    ]

    results = gen.forward(locations, batch_size)
    results = jax.block_until_ready(results)

    # Verify against a pure-numpy reference of the torch semantics.
    ok = True
    for (anchors, idxscope), loc, base, stride in zip(
            results, locations, gen.cell_anchors, gen.strides):
        ref = _reference_anchors(loc, base, stride, gen.voxel_scale)
        ok &= np.allclose(np.asarray(anchors), ref, rtol=1e-5, atol=1e-4)
        ok &= anchors.shape == (loc.shape[0] * gen.anchor_num_per_loc, 7)
        ok &= idxscope.shape == (batch_size, 2)
        ok &= int(idxscope[-1, 1]) == loc.shape[0] * gen.anchor_num_per_loc

    if ok:
        print("KERNEL_OK")
    else:
        print("MISMATCH")
</pallas_src>

<mosaic_0001>
module attributes {stable_mosaic.version = 11 : i64} {
  func.func @_anchor_kernel(%arg0: i32, %arg1: memref<3xi32, #tpu.memory_space<smem>>, %arg2: memref<3x2048xi32, #tpu.memory_space<vmem>>, %arg3: memref<1x3x1xf32, #tpu.memory_space<vmem>>, %arg4: memref<1x2x7x1xf32, #tpu.memory_space<vmem>>, %arg5: memref<2x7x2048xf32, #tpu.memory_space<vmem>>) attributes {dimension_semantics = [#tpu.dimension_semantics<parallel>], iteration_bounds = array<i64: 3>, scalar_prefetch = 1 : i64, scratch_operands = 0 : i64, tpu.core_type = #tpu.core_type<tc>, window_params = [{transform_indices = @transform_0, window_bounds = array<i64: 3, 2048>}, {transform_indices = @transform_1, window_bounds = array<i64: 1, 3, 1>}, {transform_indices = @transform_2, window_bounds = array<i64: 1, 2, 7, 1>}, {transform_indices = @transform_3, window_bounds = array<i64: 2, 7, 2048>}]} {
    %c0 = arith.constant 0 : index
    %c0_0 = arith.constant 0 : index
    %0 = vector.load %arg2[%c0, %c0_0] : memref<3x2048xi32, #tpu.memory_space<vmem>>, vector<3x2048xi32>
    %1 = arith.sitofp %0 : vector<3x2048xi32> to vector<3x2048xf32>
    %c0_1 = arith.constant 0 : index
    %c0_2 = arith.constant 0 : index
    %c0_3 = arith.constant 0 : index
    %2 = vector.load %arg3[%c0_1, %c0_2, %c0_3] : memref<1x3x1xf32, #tpu.memory_space<vmem>>, vector<1x3x1xf32>
    %3 = vector.shape_cast %2 : vector<1x3x1xf32> to vector<3x1xf32>
    %4 = vector.broadcast %3 : vector<3x1xf32> to vector<3x2048xf32>
    %5 = arith.mulf %1, %4 : vector<3x2048xf32>
    %cst = arith.constant 0.000000e+00 : f32
    %6 = vector.broadcast %cst : f32 to vector<4x2048xf32>
    %7 = tpu.concatenate %5, %6 in 0 : vector<3x2048xf32>, vector<4x2048xf32> -> vector<7x2048xf32>
    %8 = vector.shape_cast %7 : vector<7x2048xf32> to vector<1x7x2048xf32>
    %c0_4 = arith.constant 0 : index
    %c0_5 = arith.constant 0 : index
    %c0_6 = arith.constant 0 : index
    %c0_7 = arith.constant 0 : index
    %9 = vector.load %arg4[%c0_4, %c0_5, %c0_6, %c0_7] : memref<1x2x7x1xf32, #tpu.memory_space<vmem>>, vector<1x2x7x1xf32>
    %10 = vector.shape_cast %9 : vector<1x2x7x1xf32> to vector<2x7x1xf32>
    %11 = vector.broadcast %8 : vector<1x7x2048xf32> to vector<2x7x2048xf32>
    %12 = vector.broadcast %10 : vector<2x7x1xf32> to vector<2x7x2048xf32>
    %13 = arith.addf %11, %12 : vector<2x7x2048xf32>
    %c0_8 = arith.constant 0 : index
    %c0_9 = arith.constant 0 : index
    %c0_10 = arith.constant 0 : index
    %14 = vector.load %arg5[%c0_8, %c0_9, %c0_10] : memref<2x7x2048xf32, #tpu.memory_space<vmem>>, vector<2x7x2048xf32>
    tpu.vector_store %arg5[%c0_8, %c0_9, %c0_10], %13 {strides = array<i32>} : memref<2x7x2048xf32, #tpu.memory_space<vmem>>, vector<2x7x2048xf32>,
    return
  }
  func.func @transform_0(%arg0: i32, %arg1: memref<3xi32, #tpu.memory_space<smem>>) -> (i32, i32) {
    %c0_i32 = arith.constant 0 : i32
    %c0_i32_0 = arith.constant 0 : i32
    return %c0_i32, %arg0 : i32, i32
  }
  func.func @transform_1(%arg0: i32, %arg1: memref<3xi32, #tpu.memory_space<smem>>) -> (i32, i32, i32) {
    %0 = arith.index_cast %arg0 : i32 to index
    %1 = memref.load %arg1[%0] : memref<3xi32, #tpu.memory_space<smem>>
    %c0_i32 = arith.constant 0 : i32
    %c0_i32_0 = arith.constant 0 : i32
    %c0_i32_1 = arith.constant 0 : i32
    return %1, %c0_i32, %c0_i32_0 : i32, i32, i32
  }
  func.func @transform_2(%arg0: i32, %arg1: memref<3xi32, #tpu.memory_space<smem>>) -> (i32, i32, i32, i32) {
    %0 = arith.index_cast %arg0 : i32 to index
    %1 = memref.load %arg1[%0] : memref<3xi32, #tpu.memory_space<smem>>
    %c0_i32 = arith.constant 0 : i32
    %c0_i32_0 = arith.constant 0 : i32
    %c0_i32_1 = arith.constant 0 : i32
    %c0_i32_2 = arith.constant 0 : i32
    return %1, %c0_i32, %c0_i32_0, %c0_i32_1 : i32, i32, i32, i32
  }
  func.func @transform_3(%arg0: i32, %arg1: memref<3xi32, #tpu.memory_space<smem>>) -> (i32, i32, i32) {
    %c0_i32 = arith.constant 0 : i32
    %c0_i32_0 = arith.constant 0 : i32
    %c0_i32_1 = arith.constant 0 : i32
    return %c0_i32, %c0_i32_0, %arg0 : i32, i32, i32
  }
}

</mosaic_0001>

<bundles_post_ra>
// kernel: tpu_custom_call.1
= control target key start
LH: loop header
LB: loop body
LE: loop exit
PB: predicated region body
PF: predicated region fallthrough
CT: control target
= control target key end

     0   :  { %s1006_s0 = inlined_call_operand.vmem [shape: s32[3], index: 0, kind: input, shape index: {}]   ;;  %s1007_s1 = inlined_call_operand.hbm [shape: s32[3,6144], index: 1, kind: input, shape index: {}]   ;;  %s1008_s2 = inlined_call_operand.vmem [shape: f32[3,3,1], index: 2, kind: input, shape index: {}]   ;;  %s1009_s3 = inlined_call_operand.vmem [shape: f32[3,2,7,1], index: 3, kind: input, shape index: {}]   ;;  %s1010_s4 = inlined_call_operand.vmem [shape: f32[2,7,6144], index: 4, kind: output, shape index: {}]  }
   0x1   :  { %s9_s17 = sshll.u32 %s1006_s0, 4  ;;  %s10_s17 = int_to_ptr.vmem [resolvable:$true] %s9_s17 }
   0x2   :  { %s636_s18 = scalar_lea.vmem %s10_s17, 16  ;;  %p641_p1 = scmp.lt.s32.totalorder %s10_s17, %s10_s17 }
   0x3   :  { %p637_p0 = scmp.ne.s32.totalorder %s10_s17, %s636_s18  ;;  %p642_p2 = scmp.lt.s32.totalorder %s636_s18, %s636_s18 }
   0x5   :  { %p643_p3 = por %p642_p2, %p641_p1 }
   0x7   :  { %p644_p4 = pnand %p643_p3, %p637_p0 }
   0x9   :  { %647 = shalt.err (!%p644_p4)  }
   0xa   :  { %s716_s19 = smov [#allocation3]  }
   0xb   :  { %12 = dma.vmem_to_smem %s10_s17, 16, %s716_s19, [#allocation2] }
   0xc   :  { %694 = dma.done.wait [#allocation2], 16 }
   0xd   :  { %695 = vsyncadd [#allocation2], 4294967280 }
   0xe   :  { %14 = sfence }
   0xf   :  { %15 = vsyncpa [#allocation5], 0 }
  0x10   :  { %17 = vsyncpa [#allocation5 + $0x1], 0  ;;  %s748_s20 = smov 0   ;;  %s750_s21 = smov 0  }
  0x11   :  { %s752_s0 = smov 0   ;;  %s754_s22 = smov 0  }
  0x12 LB: > { %s767_s23 = sadd.s32 4294967295, %s714_s22   ;;  %s770_s24 = sadd.s32 1, %s714_s22   ;;  %s714_s22 = sphi %s754_s22, %s1021_s22   ;;  %s710_s0 = sphi %s752_s0, %s1020_s0   ;;  %s706_s21 = sphi %s750_s21, %s1019_s21   ;;  %s702_s20 = sphi %s748_s20, %s1018_s20  }
  0x13   : > { %s27_s25 = ssub.s32 %s714_s22, %s770_s24  ;;  %s30_s26 = sadd.s32 1, %s710_s0 }
  0x14   : > { %p28_p5 = scmp.eq.s32.totalorder %s27_s25, 0  ;;  %p37_p6 = scmp.ne.s32.totalorder %s710_s0, %s706_s21 }
  0x15   : > { %p38_p7 = scmp.eq.s32.totalorder %s714_s22, 0  ;;  %p43_p8 = scmp.ne.s32.totalorder %s706_s21, %s702_s20 }
  0x16   : > { %s780_s27 = scalar_select %p28_p5, %s710_s0, %s30_s26  }
  0x17   : > { %p782_p9 = por %p38_p7, %p37_p6  ;;  %p44_p10 = scmp.eq.s32.totalorder %s767_s23, 0 }
  0x18   : > { %p123_p11 = scmp.eq.s32.totalorder %s767_s23, 2  ;;  %p598_p13 = scmp.lt.s32.totalorder %s714_s22, 3 }
  0x19   : > { %p788_p12 = por %p44_p10, %p43_p8  ;;  %s149_s5 = sand.u32 1, %s710_s0  }
  0x1a   : > { %p793_p0 = por %p123_p11, %p37_p6  ;;  %s575_s6 = sshll.u32 %s149_s5, 6 }
  0x1b   : > { %s589_s7 = sshll.u32 %s714_s22, 10  ;;  %s153_s11 = scalar_lea.vmem [#allocation4], %s575_s6 }
  0x1c   : > { %s1013_s30 = scalar_select %p793_p0, 1, 0 }
  0x1d   : > { %s802_s10 = scalar_lea.hbm %s1007_s1, %s589_s7  ;;  %s161_s12 = sshll.u32 %s153_s11, 4  ;;  %s804_s12 = int_to_ptr.vmem [resolvable:$true] %s161_s12 }
  0x1e   : > { %p808_p1 = pnand %p598_p13, %p782_p9  ;;  %s150_s14 = scalar_lea.sflag [#allocation5], %s149_s5 }
  0x1f   : > { %s648_s15 = scalar_lea.hbm %s802_s10, 1024  ;;  %s653_s18 = scalar_lea.hbm %s1007_s1, 3072 }
  0x20   : > { %p649_p4 = scmp.ne.s32.totalorder %s802_s10, %s648_s15  ;;  %p650_p5 = pneg %p808_p1 }
  0x21   : > { %p654_p8 = scmp.lt.u32.totalorder %s802_s10, %s1007_s1  ;;  %p655_p9 = scmp.lt.u32.totalorder %s653_s18, %s648_s15 }
  0x22   : > { %p651_p6 = pnand %p650_p5, %p649_p4  ;;  %p657_p11 = scmp.lt.u32.totalorder %s648_s15, %s802_s10 }
  0x23   : > { %p656_p10 = por %p655_p9, %p654_p8 }
  0x24   : > { %p652_p7 = pneg %p651_p6 }
  0x25   : > { %p658_p13 = por %p657_p11, %p656_p10 }
  0x27   : > { %p659_p2 = pnand %p658_p13, %p652_p7 }
  0x29   : > { %662 = shalt.err (!%p659_p2)
}
  0x2a   : > { %s663_s25 = scalar_lea.vmem %s804_s12, 1024  ;;  %s717_s26 = smov [#allocation4]  }
  0x2b   : > { %p664_p4 = scmp.ne.s32.totalorder %s804_s12, %s663_s25  ;;  %s668_s28 = sshll.u32 %s717_s26, 4  ;;  %s669_s28 = int_to_ptr.vmem [resolvable:$false] %s668_s28 }
  0x2c   : > { %s670_s5 = scalar_lea.vmem %s669_s28, 2048  ;;  %p671_p0 = scmp.lt.s32.totalorder %s804_s12, %s669_s28 }
  0x2d   : > { %p666_p6 = pnand %p664_p4, %p650_p5  ;;  %p672_p8 = scmp.lt.s32.totalorder %s670_s5, %s663_s25 }
  0x2f   : > { %p667_p3 = pneg %p666_p6  ;;  %p673_p9 = por %p672_p8, %p671_p0 }
  0x31   : > { %p674_p10 = pnand %p673_p9, %p667_p3 }
  0x33   : > { %677 = shalt.err (!%p674_p10)
}
  0x34   : > { %597 = dma.hbm_to_vmem [thread:$0]  (!%p808_p1), %s802_s10, 1024, %s804_s12, %s150_s14  }
  0x35   : > { %p1015_p2 = scmp.lt.s32.totalorder %s714_s22, 4  ;;  %p1016_p7 = scmp.ge.s32.totalorder %s714_s22, 1 }
  0x37   : > { %p186_p5 = pnand %p1016_p7, %p1015_p2 }
  0x38   : > { %s844_s6 = sand.u32 (!%p186_p5), 1, %s706_s21  }
  0x39   : > { %189 = sbr.rel (%p186_p5) target bundleno = 250 (0xfa), region = 32  ;;  %s579_s7 = sshll.u32 (!%p186_p5), %s844_s6, 6 }
  0x3a   : > { %s192_s8 = scalar_lea.sflag (!%p186_p5), [#allocation5], %s844_s6  ;;  %s848_s9 = scalar_lea.vmem (!%p186_p5), [#allocation4], %s579_s7 }
  0x40   : > { %697 = dma.done.wait (%p788_p12), %s192_s8, 1024  }
  0x41   : > { %699 = vsyncadd (%p788_p12), %s192_s8, 4294966272  ;;  %v718_v0 = vmov 0   ;;  %s229_s22 = sld [smem:[#allocation3 + %s767_s23]]  ;;  %v719_v4 = vmov 839922192   ;;  %v267_v6 = vlaneseq  ;;  %vm304_vm0 = vcmask 1042432  }
  0x42   : > { %634 = vset.pattern.permute.xlu0 %v718_v0  ;;  %635 = vset.pattern.permute.xlu1 %v718_v0  ;;  %s235_s10 = sld [smem:[#allocation3 + %s767_s23]]  ;;  %v265_v5 = vunpack.c.l.s4 %v719_v4  ;;  %v243_v9 = vld [vmem:[%s848_s9] sm:$0x77]  ;;  %v244_v10 = vld [vmem:[%s848_s9 + $0x8] sm:$0x77]  ;;  %s580_s18 = sshll.u32 %s844_s6, 8 }
  0x43   : > { %v268_v8 = vshrl.u32 %v267_v6, 7  ;;  %v245_v11 = vld [vmem:[%s848_s9 + $0x10] sm:$0x77]  ;;  %v246_v12 = vld [vmem:[%s848_s9 + $0x18] sm:$0x77]  ;;  %v251_v18 = vcvt.s32.f32 %v243_v9  ;;  %v252_v19 = vcvt.s32.f32 %v244_v10  ;;  %s887_s19 = scalar_lea.vmem [#allocation6], %s580_s18 }
  0x44   : > { %v266_v7 = vunpack.c.0.s8 %v265_v5  ;;  %v247_v13 = vld [vmem:[%s848_s9 + $0x20] sm:$0x77]  ;;  %v248_v14 = vld [vmem:[%s848_s9 + $0x28] sm:$0x77]  ;;  %v249_v15 = vld [vmem:[%s848_s9 + $0x30] sm:$0x77]  ;;  %v253_v20 = vcvt.s32.f32 %v245_v11  ;;  %v254_v21 = vcvt.s32.f32 %v246_v12 }
  0x45   : > { %v250_v16 = vld [vmem:[%s848_s9 + $0x38] sm:$0x77]  ;;  %v255_v22 = vcvt.s32.f32 %v247_v13  ;;  %v256_v23 = vcvt.s32.f32 %v248_v14  ;;  %v257_v24 = vcvt.s32.f32 %v249_v15  ;;  %p1017_p12 = scmp.ne.s32.totalorder %s1013_s30, 0 }
  0x46   : > { %v269_v17 = vsub.s32 %v266_v7, %v268_v8  ;;  %v258_v25 = vcvt.s32.f32 %v250_v16  ;;  %s591_s20 = sshll.u32 (%p1017_p12), %s767_s23, 7 }
  0x47   : > { %p230_p0 = scmp.lt.s32.totalorder %s229_s22, 2  ;;  %s930_s28 = scalar_lea.vmem (%p1017_p12), %s1010_s4, %s591_s20 }
  0x48   : > { %p236_p1 = scmp.lt.s32.totalorder %s235_s10, 2 }
  0x49   : > { %s1023_s22 = smov (!%p230_p0, %s229_s22), 2 }
  0x4a   : > { %s1025_s10 = smov (!%p236_p1, %s235_s10), 2  ;;  %s581_s11 = sshll.u32 %s1023_s22, 2 }
  0x4b   : > { %s233_s14 = scalar_lea.vmem %s1008_s2, %s581_s11  ;;  %s590_s29 = sshll.u32 %s1025_s10, 4 }
  0x4c   : > { %v259_v1 = vld [vmem:[%s233_s14] sm:$0x7]  ;;  %s240_s17 = scalar_lea.vmem %s1009_s3, %s590_s29 }
  0x4d   : > { %262 = vperm.xlu0 %634, %v259_v1   ;;  %v322_v2 = vld [vmem:[%s240_s17 + $0x8] sm:$0x7f]  ;;  %v321_v3 = vld [vmem:[%s240_s17] sm:$0x7f] }
  0x4e   : > { %330 = vperm.xlu1 %635, %v322_v2  }
  0x51   : > { %325 = vperm.xlu0 %634, %v321_v3  }
  0xcc   : > { %v263_v26 = vpop.permute.xlu0 %262 }
  0xcd   : > { %v270_v27 = vrot.slane %v263_v26, %v269_v17  ;;  %v331_v5 = vpop.permute.xlu1 %330 }
  0xcf   : > { %v272_v28 = vmul.f32 %v270_v27, %v251_v18  ;;  %v273_v29 = vmul.f32 %v270_v27, %v252_v19  ;;  %v274_v30 = vmul.f32 %v270_v27, %v253_v20  ;;  %v275_v31 = vmul.f32 %v270_v27, %v254_v21 }
  0xd0   : > { %v276_v32 = vmul.f32 %v270_v27, %v255_v22  ;;  %v277_v33 = vmul.f32 %v270_v27, %v256_v23  ;;  %v278_v34 = vmul.f32 %v270_v27, %v257_v24  ;;  %v279_v35 = vmul.f32 %v270_v27, %v258_v25  ;;  %v326_v52 = vpop.permute.xlu0 %325 }
  0xd1   : > { %v288_v36 = vcombine.high %v272_v28, %v272_v28  ;;  %v289_v37 = vcombine.high %v273_v29, %v273_v29  ;;  %v290_v38 = vcombine.high %v274_v30, %v274_v30  ;;  %v291_v39 = vcombine.high %v275_v31, %v275_v31 }
  0xd2   : > { %v292_v40 = vcombine.high %v276_v32, %v276_v32  ;;  %v293_v41 = vcombine.high %v277_v33, %v277_v33  ;;  %v294_v42 = vcombine.high %v278_v34, %v278_v34  ;;  %v295_v43 = vcombine.high %v279_v35, %v279_v35 }
  0xd3   : > { %v305_v44 = vsel %vm304_vm0, %v272_v28, 0.0  ;;  %v306_v45 = vsel %vm304_vm0, %v288_v36, 0.0  ;;  %v307_v46 = vsel %vm304_vm0, %v273_v29, 0.0  ;;  %v308_v47 = vsel %vm304_vm0, %v289_v37, 0.0 }
  0xd4   : > { %v309_v48 = vsel %vm304_vm0, %v274_v30, 0.0  ;;  %v310_v49 = vsel %vm304_vm0, %v290_v38, 0.0  ;;  %v311_v50 = vsel %vm304_vm0, %v275_v31, 0.0  ;;  %v312_v51 = vsel %vm304_vm0, %v291_v39, 0.0 }
  0xd5   : > { %v313_v53 = vsel %vm304_vm0, %v276_v32, 0.0  ;;  %v314_v54 = vsel %vm304_vm0, %v292_v40, 0.0  ;;  %v315_v55 = vsel %vm304_vm0, %v277_v33, 0.0  ;;  %v316_v56 = vsel %vm304_vm0, %v293_v41, 0.0 }
  0xd6   : > { %v317_v57 = vsel %vm304_vm0, %v278_v34, 0.0  ;;  %v318_v58 = vsel %vm304_vm0, %v294_v42, 0.0  ;;  %v319_v59 = vsel %vm304_vm0, %v279_v35, 0.0  ;;  %v320_v60 = vsel %vm304_vm0, %v295_v43, 0.0 }
  0xd7   : > { %v333_v61 = vadd.f32 %v326_v52, %v305_v44  ;;  %v334_v62 = vadd.f32 %v326_v52, %v306_v45  ;;  %v335_v63 = vadd.f32 %v326_v52, %v307_v46  ;;  %v336_v0 = vadd.f32 %v326_v52, %v308_v47 }
  0xd8   : > { %v337_v1 = vadd.f32 %v326_v52, %v309_v48  ;;  %v338_v2 = vadd.f32 %v326_v52, %v310_v49  ;;  %v339_v3 = vadd.f32 %v326_v52, %v311_v50  ;;  %v340_v4 = vadd.f32 %v326_v52, %v312_v51 }
  0xd9   : > { %v341_v6 = vadd.f32 %v326_v52, %v313_v53  ;;  %v342_v7 = vadd.f32 %v326_v52, %v314_v54  ;;  %v343_v8 = vadd.f32 %v326_v52, %v315_v55  ;;  %v344_v9 = vadd.f32 %v326_v52, %v316_v56  ;;  %365 = vst [vmem:[%s887_s19] sm:$0x7f] %v333_v61 }
  0xda   : > { %366 = vst [vmem:[%s887_s19 + $0x8] sm:$0x7f] %v334_v62  ;;  %367 = vst [vmem:[%s887_s19 + $0x10] sm:$0x7f] %v335_v63  ;;  %v345_v10 = vadd.f32 %v326_v52, %v317_v57  ;;  %v346_v11 = vadd.f32 %v326_v52, %v318_v58  ;;  %v347_v12 = vadd.f32 %v326_v52, %v319_v59 }
  0xdb   : > { %368 = vst [vmem:[%s887_s19 + $0x18] sm:$0x7f] %v336_v0  ;;  %v348_v13 = vadd.f32 %v326_v52, %v320_v60  ;;  %369 = vst [vmem:[%s887_s19 + $0x20] sm:$0x7f] %v337_v1  ;;  %v349_v14 = vadd.f32 %v331_v5, %v305_v44  ;;  %v350_v15 = vadd.f32 %v331_v5, %v306_v45 }
  0xdc   : > { %370 = vst [vmem:[%s887_s19 + $0x28] sm:$0x7f] %v338_v2  ;;  %371 = vst [vmem:[%s887_s19 + $0x30] sm:$0x7f] %v339_v3  ;;  %v351_v16 = vadd.f32 %v331_v5, %v307_v46  ;;  %v352_v17 = vadd.f32 %v331_v5, %v308_v47  ;;  %v353_v18 = vadd.f32 %v331_v5, %v309_v48 }
  0xdd   : > { %372 = vst [vmem:[%s887_s19 + $0x38] sm:$0x7f] %v340_v4  ;;  %373 = vst [vmem:[%s887_s19 + $0x40] sm:$0x7f] %v341_v6  ;;  %v354_v19 = vadd.f32 %v331_v5, %v310_v49  ;;  %v355_v20 = vadd.f32 %v331_v5, %v311_v50  ;;  %v356_v21 = vadd.f32 %v331_v5, %v312_v51 }
  0xde   : > { %374 = vst [vmem:[%s887_s19 + $0x48] sm:$0x7f] %v342_v7  ;;  %375 = vst [vmem:[%s887_s19 + $0x50] sm:$0x7f] %v343_v8  ;;  %v357_v22 = vadd.f32 %v331_v5, %v313_v53  ;;  %v358_v23 = vadd.f32 %v331_v5, %v314_v54  ;;  %v359_v24 = vadd.f32 %v331_v5, %v315_v55 }
  0xdf   : > { %376 = vst [vmem:[%s887_s19 + $0x58] sm:$0x7f] %v344_v9  ;;  %377 = vst [vmem:[%s887_s19 + $0x60] sm:$0x7f] %v345_v10  ;;  %v360_v25 = vadd.f32 %v331_v5, %v316_v56  ;;  %v361_v26 = vadd.f32 %v331_v5, %v317_v57  ;;  %v362_v27 = vadd.f32 %v331_v5, %v318_v58 }
  0xe0   : > { %378 = vst [vmem:[%s887_s19 + $0x68] sm:$0x7f] %v346_v11  ;;  %379 = vst [vmem:[%s887_s19 + $0x70] sm:$0x7f] %v347_v12  ;;  %v363_v28 = vadd.f32 %v331_v5, %v319_v59  ;;  %v364_v29 = vadd.f32 %v331_v5, %v320_v60  ;;  %v419_v30 = vld [vmem:[%s887_s19] sm:$0xff] (%p1017_p12) }
  0xe1   : > { %380 = vst [vmem:[%s887_s19 + $0x78] sm:$0x7f] %v348_v13  ;;  %381 = vst [vmem:[%s887_s19 + $0x80] sm:$0x7f] %v349_v14  ;;  %v421_v31 = vld [vmem:[%s887_s19 + $0x8] sm:$0xff] (%p1017_p12)  ;;  %v423_v32 = vld [vmem:[%s887_s19 + $0x10] sm:$0xff] (%p1017_p12) }
  0xe2   : > { %382 = vst [vmem:[%s887_s19 + $0x88] sm:$0x7f] %v350_v15  ;;  %383 = vst [vmem:[%s887_s19 + $0x90] sm:$0x7f] %v351_v16  ;;  %v425_v33 = vld [vmem:[%s887_s19 + $0x18] sm:$0xff] (%p1017_p12)  ;;  %v427_v34 = vld [vmem:[%s887_s19 + $0x20] sm:$0xff] (%p1017_p12) }
  0xe3   : > { %384 = vst [vmem:[%s887_s19 + $0x98] sm:$0x7f] %v352_v17  ;;  %385 = vst [vmem:[%s887_s19 + $0xa0] sm:$0x7f] %v353_v18  ;;  %403 = sbr.rel (!%p1017_p12) target bundleno = 250 (0xfa), region = 40  ;;  %v429_v35 = vld [vmem:[%s887_s19 + $0x28] sm:$0xff] (%p1017_p12) }
  0xe4   : > { %386 = vst [vmem:[%s887_s19 + $0xa8] sm:$0x7f] %v354_v19  ;;  %387 = vst [vmem:[%s887_s19 + $0xb0] sm:$0x7f] %v355_v20  ;;  %v431_v36 = vld [vmem:[%s887_s19 + $0x30] sm:$0xff] (%p1017_p12)  ;;  %v433_v37 = vld [vmem:[%s887_s19 + $0x38] sm:$0xff] (%p1017_p12) }
  0xe5   : > { %388 = vst [vmem:[%s887_s19 + $0xb8] sm:$0x7f] %v356_v21  ;;  %389 = vst [vmem:[%s887_s19 + $0xc0] sm:$0x7f] %v357_v22  ;;  %v435_v38 = vld [vmem:[%s887_s19 + $0x40] sm:$0xff] (%p1017_p12)  ;;  %v437_v39 = vld [vmem:[%s887_s19 + $0x48] sm:$0xff] (%p1017_p12) }
  0xe6   : > { %390 = vst [vmem:[%s887_s19 + $0xc8] sm:$0x7f] %v358_v23  ;;  %391 = vst [vmem:[%s887_s19 + $0xd0] sm:$0x7f] %v359_v24  ;;  %v439_v40 = vld [vmem:[%s887_s19 + $0x50] sm:$0xff] (%p1017_p12)  ;;  %v441_v41 = vld [vmem:[%s887_s19 + $0x58] sm:$0xff] (%p1017_p12) }
  0xe7   : > { %392 = vst [vmem:[%s887_s19 + $0xd8] sm:$0x7f] %v360_v25  ;;  %393 = vst [vmem:[%s887_s19 + $0xe0] sm:$0x7f] %v361_v26  ;;  %v443_v42 = vld [vmem:[%s887_s19 + $0x60] sm:$0xff] (%p1017_p12)  ;;  %v445_v43 = vld [vmem:[%s887_s19 + $0x68] sm:$0xff] (%p1017_p12) }
  0xe8   : > { %394 = vst [vmem:[%s887_s19 + $0xe8] sm:$0x7f] %v362_v27  ;;  %395 = vst [vmem:[%s887_s19 + $0xf0] sm:$0x7f] %v363_v28  ;;  %v447_v44 = vld [vmem:[%s887_s19 + $0x70] sm:$0xff] (%p1017_p12)  ;;  %v449_v45 = vld [vmem:[%s887_s19 + $0x78] sm:$0xff] (%p1017_p12) }
  0xe9   : > { %396 = vst [vmem:[%s887_s19 + $0xf8] sm:$0x7f] %v364_v29  ;;  %420 = vst [vmem:[%s930_s28] sm:$0xff] (%p1017_p12), %v419_v30  ;;  %v451_v46 = vld [vmem:[%s887_s19 + $0x80] sm:$0xff] (%p1017_p12)  ;;  %v453_v47 = vld [vmem:[%s887_s19 + $0x88] sm:$0xff] (%p1017_p12) }
  0xea   : > { %422 = vst [vmem:[%s930_s28 + $0x8] sm:$0xff] %v421_v31  ;;  %424 = vst [vmem:[%s930_s28 + $0x10] sm:$0xff] %v423_v32  ;;  %v455_v48 = vld [vmem:[%s887_s19 + $0x90] sm:$0xff]  ;;  %v457_v49 = vld [vmem:[%s887_s19 + $0x98] sm:$0xff] }
  0xeb   : > { %426 = vst [vmem:[%s930_s28 + $0x18] sm:$0xff] %v425_v33  ;;  %428 = vst [vmem:[%s930_s28 + $0x20] sm:$0xff] %v427_v34  ;;  %v459_v50 = vld [vmem:[%s887_s19 + $0xa0] sm:$0xff]  ;;  %v461_v51 = vld [vmem:[%s887_s19 + $0xa8] sm:$0xff] }
  0xec   : > { %430 = vst [vmem:[%s930_s28 + $0x28] sm:$0xff] %v429_v35  ;;  %432 = vst [vmem:[%s930_s28 + $0x30] sm:$0xff] %v431_v36  ;;  %v463_v52 = vld [vmem:[%s887_s19 + $0xb0] sm:$0xff]  ;;  %v465_v53 = vld [vmem:[%s887_s19 + $0xb8] sm:$0xff] }
  0xed   : > { %434 = vst [vmem:[%s930_s28 + $0x38] sm:$0xff] %v433_v37  ;;  %436 = vst [vmem:[%s930_s28 + $0x40] sm:$0xff] %v435_v38  ;;  %v467_v54 = vld [vmem:[%s887_s19 + $0xc0] sm:$0xff]  ;;  %v469_v55 = vld [vmem:[%s887_s19 + $0xc8] sm:$0xff] }
  0xee   : > { %438 = vst [vmem:[%s930_s28 + $0x48] sm:$0xff] %v437_v39  ;;  %440 = vst [vmem:[%s930_s28 + $0x50] sm:$0xff] %v439_v40  ;;  %v471_v56 = vld [vmem:[%s887_s19 + $0xd0] sm:$0xff]  ;;  %v473_v57 = vld [vmem:[%s887_s19 + $0xd8] sm:$0xff] }
  0xef   : > { %442 = vst [vmem:[%s930_s28 + $0x58] sm:$0xff] %v441_v41  ;;  %444 = vst [vmem:[%s930_s28 + $0x60] sm:$0xff] %v443_v42  ;;  %v475_v58 = vld [vmem:[%s887_s19 + $0xe0] sm:$0xff]  ;;  %v477_v59 = vld [vmem:[%s887_s19 + $0xe8] sm:$0xff] }
  0xf0   : > { %446 = vst [vmem:[%s930_s28 + $0x68] sm:$0xff] %v445_v43  ;;  %448 = vst [vmem:[%s930_s28 + $0x70] sm:$0xff] %v447_v44  ;;  %v479_v60 = vld [vmem:[%s887_s19 + $0xf0] sm:$0xff]  ;;  %v481_v61 = vld [vmem:[%s887_s19 + $0xf8] sm:$0xff] }
  0xf1   : > { %450 = vst [vmem:[%s930_s28 + $0x78] sm:$0xff] %v449_v45  ;;  %452 = vst [vmem:[%s930_s28 + $0x180] sm:$0xff] %v451_v46 }
  0xf2   : > { %454 = vst [vmem:[%s930_s28 + $0x188] sm:$0xff] %v453_v47  ;;  %456 = vst [vmem:[%s930_s28 + $0x190] sm:$0xff] %v455_v48 }
  0xf3   : > { %458 = vst [vmem:[%s930_s28 + $0x198] sm:$0xff] %v457_v49  ;;  %460 = vst [vmem:[%s930_s28 + $0x1a0] sm:$0xff] %v459_v50 }
  0xf4   : > { %462 = vst [vmem:[%s930_s28 + $0x1a8] sm:$0xff] %v461_v51  ;;  %464 = vst [vmem:[%s930_s28 + $0x1b0] sm:$0xff] %v463_v52 }
  0xf5   : > { %466 = vst [vmem:[%s930_s28 + $0x1b8] sm:$0xff] %v465_v53  ;;  %468 = vst [vmem:[%s930_s28 + $0x1c0] sm:$0xff] %v467_v54 }
  0xf6   : > { %470 = vst [vmem:[%s930_s28 + $0x1c8] sm:$0xff] %v469_v55  ;;  %472 = vst [vmem:[%s930_s28 + $0x1d0] sm:$0xff] %v471_v56 }
  0xf7   : > { %474 = vst [vmem:[%s930_s28 + $0x1d8] sm:$0xff] %v473_v57  ;;  %476 = vst [vmem:[%s930_s28 + $0x1e0] sm:$0xff] %v475_v58 }
  0xf8   : > { %478 = vst [vmem:[%s930_s28 + $0x1e8] sm:$0xff] %v477_v59  ;;  %480 = vst [vmem:[%s930_s28 + $0x1f0] sm:$0xff] %v479_v60 }
  0xf9   : > { %482 = vst [vmem:[%s930_s28 + $0x1f8] sm:$0xff] %v481_v61 }
  0xfa PF: > { %p20_p3 = scmp.ge.s32.totalorder %s770_s24, 5   ;;  %s1018_s20 = smov %s706_s21 }
  0xfb   : > { %s1019_s21 = smov %s710_s0  ;;  %s1020_s0 = smov %s780_s27 }
  0xfc   : > { %s1021_s22 = smov %s770_s24  ;;  %22 = sbr.rel (!%p20_p3) target bundleno = 18 (0x12), region = 101 }
 0x103   :  { %498 = vsyncpa [#allocation5], 1 }
 0x104   :  { %500 = vsyncpa [#allocation5 + $0x1], 1 }

</bundles_post_ra>
